<compile_context>
chip_gen: v5e
topology: v5e:2x2
jax: 0.10.0
libtpu: 0.0.40
codegen_flags: <defaults>
</compile_context>

<pallas_src>
import jax
import jax.numpy as jnp
from jax.experimental import pallas as pl
from jax.experimental.pallas import tpu as pltpu


def _cdiv(a, b):
    return (a + b - 1) // b


def _round_up(a, m):
    return ((a + m - 1) // m) * m


def prior_block_kernel(c_ref,
                       w1_ref, b1_ref,
                       w2_ref, b2_ref,
                       w3_ref, b3_ref,
                       wmu_ref, bmu_ref,
                       wlv_ref, blv_ref,
                       mu_ref, lv_ref):
    f32 = jnp.float32
    x = c_ref[...]

    # mlp: Linear -> ReLU -> Linear -> ReLU -> Linear (all f32 on the MXU)
    h = jnp.dot(x, w1_ref[...], preferred_element_type=f32) + b1_ref[...]
    h = jnp.maximum(h, 0.0)
    h = jnp.dot(h, w2_ref[...], preferred_element_type=f32) + b2_ref[...]
    h = jnp.maximum(h, 0.0)
    h = jnp.dot(h, w3_ref[...], preferred_element_type=f32) + b3_ref[...]

    # Two heads -> two outputs (block last dim == full array dim, no lane padding).
    mu_ref[...] = (jnp.dot(h, wmu_ref[...], preferred_element_type=f32)
                   + bmu_ref[...]).astype(mu_ref.dtype)
    lv_ref[...] = (jnp.dot(h, wlv_ref[...], preferred_element_type=f32)
                   + blv_ref[...]).astype(lv_ref.dtype)


def prior_block(c, params, *, max_tile_b=4096):
    """c: [B, cond_dim] float32. Returns (mu, logvar), each [B, latent_dim]."""
    (w1, b1), (w2, b2), (w3, b3), (wmu, bmu), (wlv, blv) = params
    B, cond_dim = c.shape
    latent_dim = wmu.shape[1]

    # --- balanced batch tiling -------------------------------------------------
    n_tiles = max(1, _cdiv(B, max_tile_b))
    # Give v7x's two TensorCores something to split whenever there are >= 2 full
    # sublane groups of rows; one extra grid step is harmless on v5e/v6e.
    if n_tiles == 1 and B >= 16:
        n_tiles = 2
    tile_b = _round_up(_cdiv(B, n_tiles), 8)      # multiple of 8 sublanes
    Bp = n_tiles * tile_b
    c_p = jnp.pad(c, ((0, Bp - B), (0, 0))) if Bp != B else c

    # --- specs -----------------------------------------------------------------
    # Grid-invariant operands (weights/biases) keep a constant block index, so Pallas
    # DMAs them exactly once even for multi-step grids.
    wspec = lambda shape: pl.BlockSpec(shape, lambda i: (0, 0))

    grid_spec = pltpu.PrefetchScalarGridSpec(
        num_scalar_prefetch=0,
        grid=(n_tiles,),
        in_specs=[
            pl.BlockSpec((tile_b, cond_dim), lambda i: (i, 0)),   # c tile
            wspec(w1.shape), wspec(b1.shape),
            wspec(w2.shape), wspec(b2.shape),
            wspec(w3.shape), wspec(b3.shape),
            wspec(wmu.shape), wspec(bmu.shape),
            wspec(wlv.shape), wspec(blv.shape),
        ],
        out_specs=[
            pl.BlockSpec((tile_b, latent_dim), lambda i: (i, 0)),  # mu
            pl.BlockSpec((tile_b, latent_dim), lambda i: (i, 0)),  # logvar
        ],
    )

    # Advisory cost: tiny FLOPs, memory-dominated.
    weight_bytes = 4 * sum(int(w.size) + int(b.size) for (w, b) in params)
    flops = 2 * Bp * (cond_dim * 16 + 16 * 32 + 32 * 64 + 2 * 64 * latent_dim)
    bytes_accessed = 4 * Bp * (cond_dim + 2 * latent_dim) + weight_bytes
    cost = pl.CostEstimate(flops=int(flops), transcendentals=0,
                           bytes_accessed=int(bytes_accessed))

    mu_full, lv_full = pl.pallas_call(
        prior_block_kernel,
        out_shape=(jax.ShapeDtypeStruct((Bp, latent_dim), jnp.float32),
                   jax.ShapeDtypeStruct((Bp, latent_dim), jnp.float32)),
        grid_spec=grid_spec,
        compiler_params=pltpu.CompilerParams(
            dimension_semantics=(pltpu.PARALLEL,)),
        cost_estimate=cost,
    )(c_p, w1, b1, w2, b2, w3, b3, wmu, bmu, wlv, blv)

    if Bp != B:
        mu_full = mu_full[:B]
        lv_full = lv_full[:B]
    return mu_full, lv_full


def init_params(key, cond_dim, latent_dim):
    """Deterministic PyTorch-style (uniform +/- 1/sqrt(fan_in)) init.

    Weights are stored as [in_features, out_features] (transposed relative to
    torch's nn.Linear.weight); biases as [1, out_features]."""
    dims = [(cond_dim, 16), (16, 32), (32, 64), (64, latent_dim), (64, latent_dim)]
    params = []
    for (fan_in, fan_out) in dims:
        key, kw, kb = jax.random.split(key, 3)
        bound = 1.0 / jnp.sqrt(float(fan_in))
        w = jax.random.uniform(kw, (fan_in, fan_out), jnp.float32, -bound, bound)
        b = jax.random.uniform(kb, (1, fan_out), jnp.float32, -bound, bound)
        params.append((w, b))
    return params


def prior_block_ref(c, params):
    """Pure-JAX reference for correctness checking."""
    (w1, b1), (w2, b2), (w3, b3), (wmu, bmu), (wlv, blv) = params
    h = jnp.maximum(c @ w1 + b1, 0.0)
    h = jnp.maximum(h @ w2 + b2, 0.0)
    h = h @ w3 + b3
    return h @ wmu + bmu, h @ wlv + blv


if __name__ == "__main__":
    B, COND_DIM, LATENT_DIM = 16, 8, 32

    key = jax.random.PRNGKey(0)
    k_c, k_p = jax.random.split(key)
    c = jax.random.normal(k_c, (B, COND_DIM), jnp.float32)
    params = init_params(k_p, COND_DIM, LATENT_DIM)

    mu, logvar = jax.jit(prior_block)(c, params)
    jax.block_until_ready((mu, logvar))

    mu_ref, logvar_ref = prior_block_ref(c, params)
    assert mu.shape == (B, LATENT_DIM) and logvar.shape == (B, LATENT_DIM)
    assert jnp.allclose(mu, mu_ref, atol=1e-5, rtol=1e-5)
    assert jnp.allclose(logvar, logvar_ref, atol=1e-5, rtol=1e-5)

    print("KERNEL_OK")
</pallas_src>

<mosaic_0001>
module attributes {stable_mosaic.version = 11 : i64} {
  func.func @prior_block_kernel(%arg0: i32, %arg1: memref<8x8xf32, #tpu.memory_space<vmem>>, %arg2: memref<8x16xf32, #tpu.memory_space<vmem>>, %arg3: memref<1x16xf32, #tpu.memory_space<vmem>>, %arg4: memref<16x32xf32, #tpu.memory_space<vmem>>, %arg5: memref<1x32xf32, #tpu.memory_space<vmem>>, %arg6: memref<32x64xf32, #tpu.memory_space<vmem>>, %arg7: memref<1x64xf32, #tpu.memory_space<vmem>>, %arg8: memref<64x32xf32, #tpu.memory_space<vmem>>, %arg9: memref<1x32xf32, #tpu.memory_space<vmem>>, %arg10: memref<64x32xf32, #tpu.memory_space<vmem>>, %arg11: memref<1x32xf32, #tpu.memory_space<vmem>>, %arg12: memref<8x32xf32, #tpu.memory_space<vmem>>, %arg13: memref<8x32xf32, #tpu.memory_space<vmem>>) attributes {dimension_semantics = [#tpu.dimension_semantics<parallel>], iteration_bounds = array<i64: 2>, scalar_prefetch = 0 : i64, scratch_operands = 0 : i64, tpu.core_type = #tpu.core_type<tc>, window_params = [{transform_indices = @transform_0, window_bounds = array<i64: 8, 8>}, {pipeline_mode = #tpu.pipeline_mode<synchronous>, transform_indices = @transform_1, window_bounds = array<i64: 8, 16>}, {pipeline_mode = #tpu.pipeline_mode<synchronous>, transform_indices = @transform_2, window_bounds = array<i64: 1, 16>}, {pipeline_mode = #tpu.pipeline_mode<synchronous>, transform_indices = @transform_3, window_bounds = array<i64: 16, 32>}, {pipeline_mode = #tpu.pipeline_mode<synchronous>, transform_indices = @transform_4, window_bounds = array<i64: 1, 32>}, {pipeline_mode = #tpu.pipeline_mode<synchronous>, transform_indices = @transform_5, window_bounds = array<i64: 32, 64>}, {pipeline_mode = #tpu.pipeline_mode<synchronous>, transform_indices = @transform_6, window_bounds = array<i64: 1, 64>}, {pipeline_mode = #tpu.pipeline_mode<synchronous>, transform_indices = @transform_7, window_bounds = array<i64: 64, 32>}, {pipeline_mode = #tpu.pipeline_mode<synchronous>, transform_indices = @transform_8, window_bounds = array<i64: 1, 32>}, {pipeline_mode = #tpu.pipeline_mode<synchronous>, transform_indices = @transform_9, window_bounds = array<i64: 64, 32>}, {pipeline_mode = #tpu.pipeline_mode<synchronous>, transform_indices = @transform_10, window_bounds = array<i64: 1, 32>}, {transform_indices = @transform_11, window_bounds = array<i64: 8, 32>}, {transform_indices = @transform_12, window_bounds = array<i64: 8, 32>}]} {
    %c0 = arith.constant 0 : index
    %c0_0 = arith.constant 0 : index
    %0 = vector.load %arg1[%c0, %c0_0] : memref<8x8xf32, #tpu.memory_space<vmem>>, vector<8x8xf32>
    %c0_1 = arith.constant 0 : index
    %c0_2 = arith.constant 0 : index
    %1 = vector.load %arg2[%c0_1, %c0_2] : memref<8x16xf32, #tpu.memory_space<vmem>>, vector<8x16xf32>
    %cst = arith.constant dense<0.000000e+00> : vector<8x16xf32>
    %2 = tpu.matmul %0, %1, %cst {dimension_numbers = #tpu.dot_dimension_numbers<[1], [0], [0], [1], [0, 0, 1, 1], [], []>} : vector<8x8xf32>, vector<8x16xf32>, vector<8x16xf32> -> vector<8x16xf32>
    %c0_3 = arith.constant 0 : index
    %c0_4 = arith.constant 0 : index
    %3 = vector.load %arg3[%c0_3, %c0_4] : memref<1x16xf32, #tpu.memory_space<vmem>>, vector<1x16xf32>
    %4 = vector.broadcast %3 : vector<1x16xf32> to vector<8x16xf32>
    %5 = arith.addf %2, %4 : vector<8x16xf32>
    %cst_5 = arith.constant 0.000000e+00 : f32
    %6 = vector.broadcast %cst_5 : f32 to vector<8x16xf32>
    %7 = arith.maximumf %5, %6 : vector<8x16xf32>
    %c0_6 = arith.constant 0 : index
    %c0_7 = arith.constant 0 : index
    %8 = vector.load %arg4[%c0_6, %c0_7] : memref<16x32xf32, #tpu.memory_space<vmem>>, vector<16x32xf32>
    %cst_8 = arith.constant dense<0.000000e+00> : vector<8x32xf32>
    %9 = tpu.matmul %7, %8, %cst_8 {dimension_numbers = #tpu.dot_dimension_numbers<[1], [0], [0], [1], [0, 0, 1, 1], [], []>} : vector<8x16xf32>, vector<16x32xf32>, vector<8x32xf32> -> vector<8x32xf32>
    %c0_9 = arith.constant 0 : index
    %c0_10 = arith.constant 0 : index
    %10 = vector.load %arg5[%c0_9, %c0_10] : memref<1x32xf32, #tpu.memory_space<vmem>>, vector<1x32xf32>
    %11 = vector.broadcast %10 : vector<1x32xf32> to vector<8x32xf32>
    %12 = arith.addf %9, %11 : vector<8x32xf32>
    %cst_11 = arith.constant 0.000000e+00 : f32
    %13 = vector.broadcast %cst_11 : f32 to vector<8x32xf32>
    %14 = arith.maximumf %12, %13 : vector<8x32xf32>
    %c0_12 = arith.constant 0 : index
    %c0_13 = arith.constant 0 : index
    %15 = vector.load %arg6[%c0_12, %c0_13] : memref<32x64xf32, #tpu.memory_space<vmem>>, vector<32x64xf32>
    %cst_14 = arith.constant dense<0.000000e+00> : vector<8x64xf32>
    %16 = tpu.matmul %14, %15, %cst_14 {dimension_numbers = #tpu.dot_dimension_numbers<[1], [0], [0], [1], [0, 0, 1, 1], [], []>} : vector<8x32xf32>, vector<32x64xf32>, vector<8x64xf32> -> vector<8x64xf32>
    %c0_15 = arith.constant 0 : index
    %c0_16 = arith.constant 0 : index
    %17 = vector.load %arg7[%c0_15, %c0_16] : memref<1x64xf32, #tpu.memory_space<vmem>>, vector<1x64xf32>
    %18 = vector.broadcast %17 : vector<1x64xf32> to vector<8x64xf32>
    %19 = arith.addf %16, %18 : vector<8x64xf32>
    %c0_17 = arith.constant 0 : index
    %c0_18 = arith.constant 0 : index
    %20 = vector.load %arg8[%c0_17, %c0_18] : memref<64x32xf32, #tpu.memory_space<vmem>>, vector<64x32xf32>
    %cst_19 = arith.constant dense<0.000000e+00> : vector<8x32xf32>
    %21 = tpu.matmul %19, %20, %cst_19 {dimension_numbers = #tpu.dot_dimension_numbers<[1], [0], [0], [1], [0, 0, 1, 1], [], []>} : vector<8x64xf32>, vector<64x32xf32>, vector<8x32xf32> -> vector<8x32xf32>
    %c0_20 = arith.constant 0 : index
    %c0_21 = arith.constant 0 : index
    %22 = vector.load %arg9[%c0_20, %c0_21] : memref<1x32xf32, #tpu.memory_space<vmem>>, vector<1x32xf32>
    %23 = vector.broadcast %22 : vector<1x32xf32> to vector<8x32xf32>
    %24 = arith.addf %21, %23 : vector<8x32xf32>
    %c0_22 = arith.constant 0 : index
    %c0_23 = arith.constant 0 : index
    %25 = vector.load %arg12[%c0_22, %c0_23] : memref<8x32xf32, #tpu.memory_space<vmem>>, vector<8x32xf32>
    tpu.vector_store %arg12[%c0_22, %c0_23], %24 {strides = array<i32>} : memref<8x32xf32, #tpu.memory_space<vmem>>, vector<8x32xf32>,
    %c0_24 = arith.constant 0 : index
    %c0_25 = arith.constant 0 : index
    %26 = vector.load %arg10[%c0_24, %c0_25] : memref<64x32xf32, #tpu.memory_space<vmem>>, vector<64x32xf32>
    %cst_26 = arith.constant dense<0.000000e+00> : vector<8x32xf32>
    %27 = tpu.matmul %19, %26, %cst_26 {dimension_numbers = #tpu.dot_dimension_numbers<[1], [0], [0], [1], [0, 0, 1, 1], [], []>} : vector<8x64xf32>, vector<64x32xf32>, vector<8x32xf32> -> vector<8x32xf32>
    %c0_27 = arith.constant 0 : index
    %c0_28 = arith.constant 0 : index
    %28 = vector.load %arg11[%c0_27, %c0_28] : memref<1x32xf32, #tpu.memory_space<vmem>>, vector<1x32xf32>
    %29 = vector.broadcast %28 : vector<1x32xf32> to vector<8x32xf32>
    %30 = arith.addf %27, %29 : vector<8x32xf32>
    %c0_29 = arith.constant 0 : index
    %c0_30 = arith.constant 0 : index
    %31 = vector.load %arg13[%c0_29, %c0_30] : memref<8x32xf32, #tpu.memory_space<vmem>>, vector<8x32xf32>
    tpu.vector_store %arg13[%c0_29, %c0_30], %30 {strides = array<i32>} : memref<8x32xf32, #tpu.memory_space<vmem>>, vector<8x32xf32>,
    return
  }
  func.func @transform_0(%arg0: i32) -> (i32, i32) {
    %c0_i32 = arith.constant 0 : i32
    %c0_i32_0 = arith.constant 0 : i32
    return %arg0, %c0_i32 : i32, i32
  }
  func.func @transform_1(%arg0: i32) -> (i32, i32) {
    %c0_i32 = arith.constant 0 : i32
    %c0_i32_0 = arith.constant 0 : i32
    %c0_i32_1 = arith.constant 0 : i32
    return %c0_i32, %c0_i32_0 : i32, i32
  }
  func.func @transform_2(%arg0: i32) -> (i32, i32) {
    %c0_i32 = arith.constant 0 : i32
    %c0_i32_0 = arith.constant 0 : i32
    %c0_i32_1 = arith.constant 0 : i32
    return %c0_i32, %c0_i32_0 : i32, i32
  }
  func.func @transform_3(%arg0: i32) -> (i32, i32) {
    %c0_i32 = arith.constant 0 : i32
    %c0_i32_0 = arith.constant 0 : i32
    %c0_i32_1 = arith.constant 0 : i32
    return %c0_i32, %c0_i32_0 : i32, i32
  }
  func.func @transform_4(%arg0: i32) -> (i32, i32) {
    %c0_i32 = arith.constant 0 : i32
    %c0_i32_0 = arith.constant 0 : i32
    %c0_i32_1 = arith.constant 0 : i32
    return %c0_i32, %c0_i32_0 : i32, i32
  }
  func.func @transform_5(%arg0: i32) -> (i32, i32) {
    %c0_i32 = arith.constant 0 : i32
    %c0_i32_0 = arith.constant 0 : i32
    %c0_i32_1 = arith.constant 0 : i32
    return %c0_i32, %c0_i32_0 : i32, i32
  }
  func.func @transform_6(%arg0: i32) -> (i32, i32) {
    %c0_i32 = arith.constant 0 : i32
    %c0_i32_0 = arith.constant 0 : i32
    %c0_i32_1 = arith.constant 0 : i32
    return %c0_i32, %c0_i32_0 : i32, i32
  }
  func.func @transform_7(%arg0: i32) -> (i32, i32) {
    %c0_i32 = arith.constant 0 : i32
    %c0_i32_0 = arith.constant 0 : i32
    %c0_i32_1 = arith.constant 0 : i32
    return %c0_i32, %c0_i32_0 : i32, i32
  }
  func.func @transform_8(%arg0: i32) -> (i32, i32) {
    %c0_i32 = arith.constant 0 : i32
    %c0_i32_0 = arith.constant 0 : i32
    %c0_i32_1 = arith.constant 0 : i32
    return %c0_i32, %c0_i32_0 : i32, i32
  }
  func.func @transform_9(%arg0: i32) -> (i32, i32) {
    %c0_i32 = arith.constant 0 : i32
    %c0_i32_0 = arith.constant 0 : i32
    %c0_i32_1 = arith.constant 0 : i32
    return %c0_i32, %c0_i32_0 : i32, i32
  }
  func.func @transform_10(%arg0: i32) -> (i32, i32) {
    %c0_i32 = arith.constant 0 : i32
    %c0_i32_0 = arith.constant 0 : i32
    %c0_i32_1 = arith.constant 0 : i32
    return %c0_i32, %c0_i32_0 : i32, i32
  }
  func.func @transform_11(%arg0: i32) -> (i32, i32) {
    %c0_i32 = arith.constant 0 : i32
    %c0_i32_0 = arith.constant 0 : i32
    return %arg0, %c0_i32 : i32, i32
  }
  func.func @transform_12(%arg0: i32) -> (i32, i32) {
    %c0_i32 = arith.constant 0 : i32
    %c0_i32_0 = arith.constant 0 : i32
    return %arg0, %c0_i32 : i32, i32
  }
}

</mosaic_0001>

<bundles_post_ra>
// kernel: prior_block.1
= control target key start
LH: loop header
LB: loop body
LE: loop exit
PB: predicated region body
PF: predicated region fallthrough
CT: control target
= control target key end

     0   :  { %s1129_s0 = inlined_call_operand.vmem [shape: f32[16,8], index: 0, kind: input, shape index: {}]   ;;  %s1130_s1 = inlined_call_operand.vmem [shape: f32[8,16], index: 1, kind: input, shape index: {}]   ;;  %s1131_s2 = inlined_call_operand.vmem [shape: f32[1,16], index: 2, kind: input, shape index: {}]   ;;  %s1132_s3 = inlined_call_operand.vmem [shape: f32[16,32], index: 3, kind: input, shape index: {}]   ;;  %s1133_s4 = inlined_call_operand.vmem [shape: f32[1,32], index: 4, kind: input, shape index: {}]   ;;  %s1134_s5 = inlined_call_operand.vmem [shape: f32[32,64], index: 5, kind: input, shape index: {}]   ;;  %s1135_s6 = inlined_call_operand.vmem [shape: f32[1,64], index: 6, kind: input, shape index: {}]   ;;  %s1136_s7 = inlined_call_operand.vmem [shape: f32[64,32], index: 7, kind: input, shape index: {}]   ;;  %s1137_s8 = inlined_call_operand.vmem [shape: f32[1,32], index: 8, kind: input, shape index: {}]   ;;  %s1138_s9 = inlined_call_operand.vmem [shape: f32[64,32], index: 9, kind: input, shape index: {}]   ;;  %s1139_s10 = inlined_call_operand.vmem [shape: f32[1,32], index: 10, kind: input, shape index: {}]   ;;  %s1140_s11 = inlined_call_operand.hbm [shape: f32[16,32], index: 11, kind: output, shape index: {0}]   ;;  %s1141_s12 = inlined_call_operand.hbm [shape: f32[16,32], index: 12, kind: output, shape index: {1}]  }
   0x1   :  { %1142 = sst [smem:[#allocation9_spill]] %s1129_s0 }
   0x2   :  { %1143 = sst [smem:[#allocation10_spill]] %s1130_s1 }
   0x3   :  { %1144 = sst [smem:[#allocation11_spill]] %s1131_s2 }
   0x4   :  { %1145 = sst [smem:[#allocation12_spill]] %s1132_s3 }
   0x5   :  { %1146 = sst [smem:[#allocation13_spill]] %s1133_s4 }
   0x6   :  { %1147 = sst [smem:[#allocation14_spill]] %s1134_s5 }
   0x7   :  { %1148 = sst [smem:[#allocation15_spill]] %s1135_s6 }
   0x8   :  { %18 = vsyncpa [#allocation3], 0 }
   0x9   :  { %20 = vsyncpa [#allocation3 + $0x1], 0 }
   0xa   :  { %21 = vsyncpa [#allocation5], 0 }
   0xb   :  { %23 = vsyncpa [#allocation5 + $0x1], 0  ;;  %s939_s21 = smov 0   ;;  %s941_s22 = smov 0  }
   0xc   :  { %s943_s23 = smov 0   ;;  %s945_s24 = smov 0  }
   0xd LB: > { %s960_s25 = sadd.s32 4294967295, %s872_s24   ;;  %s711_s26 = sadd.s32 4294967294, %s872_s24   ;;  %s872_s24 = sphi %s945_s24, %s1163_s24   ;;  %s868_s23 = sphi %s943_s23, %s1162_s23   ;;  %s864_s22 = sphi %s941_s22, %s1161_s22   ;;  %s860_s21 = sphi %s939_s21, %s1160_s21  }
   0xe   : > { %s964_s27 = sadd.s32 1, %s872_s24   ;;  %s272_s28 = sadd.s32 1, %s868_s23 }
   0xf   : > { %s269_s29 = ssub.s32 %s872_s24, %s964_s27  ;;  %p282_p0 = scmp.ne.s32.totalorder %s868_s23, %s864_s22 }
  0x10   : > { %p270_p1 = scmp.eq.s32.totalorder %s269_s29, 0  ;;  %p283_p2 = scmp.eq.s32.totalorder %s960_s25, 1 }
  0x11   : > { %p288_p3 = scmp.ne.s32.totalorder %s864_s22, %s860_s21  ;;  %p289_p4 = scmp.eq.s32.totalorder %s711_s26, 1 }
  0x12   : > { %s975_s30 = scalar_select %p270_p1, %s868_s23, %s272_s28  }
  0x13   : > { %p977_p5 = por %p283_p2, %p282_p0  ;;  %p981_p6 = por %p289_p4, %p288_p3 }
  0x14   : > { %1149 = sst [smem:[#allocation8_spill]] %s975_s30  ;;  %p714_p7 = scmp.ge.s32.totalorder %s872_s24, 1 }
  0x15   : > { %p370_p8 = scmp.lt.s32.totalorder %s872_s24, 3 }
  0x17   : > { %p371_p9 = pnand %p714_p7, %p370_p8 }
  0x18   : > { %s1152_s1 = sld [smem:[#allocation10_spill]] (!%p371_p9)  ;;  %p416_p10 = scmp.lt.s32.totalorder (!%p371_p9), %s960_s25, 1 }
  0x19   : > { %374 = sbr.rel (%p371_p9) target bundleno = 572 (0x23c), region = 64  ;;  %s1153_s3 = sld [smem:[#allocation12_spill]] (!%p371_p9) }
  0x1a   : > { %s1154_s0 = sld [smem:[#allocation9_spill]] (!%p371_p9)  ;;  %s1072_s17 = sand.u32 (!%p371_p9), 1, %s864_s22  }
  0x1b   : > { %s1155_s5 = sld [smem:[#allocation14_spill]] (!%p371_p9)  ;;  %s725_s18 = sshll.u32 (!%p371_p9), %s960_s25, 3 }
  0x1c   : > { %s1156_s2 = sld [smem:[#allocation11_spill]] (!%p371_p9)  ;;  %s614_s28 = scalar_lea.hbm (!%p371_p9), %s1141_s12, %s725_s18 }
  0x1d   : > { %s1157_s4 = sld [smem:[#allocation13_spill]] (!%p371_p9)  ;;  %s618_s16 = sshll.u32 (!%p371_p9), %s614_s28, 4  ;;  %s619_s16 = int_to_ptr.hbm [resolvable:$true] %s618_s16 }
  0x1e   : > { %v421_v0 = vld [vmem:[%s1152_s1] sm:$0xff]  ;;  %s417_s19 = scalar_select %p416_p10, %s960_s25, 1  ;;  %vm426_vm0 = vcmask 64512   ;;  %vm457_vm1 = vcmask 130048   ;;  %v521_v12 = vld [vmem:[%s1136_s7 + $0x38] sm:$0xff]  ;;  %v520_v14 = vld [vmem:[%s1136_s7 + $0x30] sm:$0xff] }
  0x1f   : > { %v452_v1 = vld [vmem:[%s1153_s3 + $0x8] sm:$0xff]  ;;  %445 = vmatpush.msra.mxu1 %v421_v0  ;;  %v451_v3 = vld [vmem:[%s1153_s3] sm:$0xff]  ;;  %v558_v13 = vld [vmem:[%s1138_s9 + $0x38] sm:$0xff]  ;;  %538 = vmatpush.msra.mxu3 %v521_v12  ;;  %vm490_vm2 = vcmask 261120   ;;  %s1158_s6 = sld [smem:[#allocation15_spill]]  ;;  %vm526_vm3 = vcmask 523264   ;;  %s600_s3 = scalar_lea.hbm %s1140_s11, %s725_s18 }
  0x20   : > { %s717_s20 = sshll.u32 %s417_s19, 3  ;;  %571 = vmatpush.msra.mxu0 %v558_v13  ;;  %v557_v15 = vld [vmem:[%s1138_s9 + $0x30] sm:$0xff]  ;;  %v519_v16 = vld [vmem:[%s1136_s7 + $0x28] sm:$0xff]  ;;  %v518_v18 = vld [vmem:[%s1136_s7 + $0x20] sm:$0xff]  ;;  %s715_s19 = sshll.u32 %s1072_s17, 3 }
  0x21   : > { %475 = vmatpush.msrb.mxu1 %v452_v1  ;;  %s419_s29 = scalar_lea.vmem %s1154_s0, %s717_s20  ;;  %v485_v4 = vld [vmem:[%s1155_s5 + $0x18] sm:$0xff]  ;;  %v484_v9 = vld [vmem:[%s1155_s5 + $0x10] sm:$0xff]  ;;  %v483_v10 = vld [vmem:[%s1155_s5 + $0x8] sm:$0xff]  ;;  %539 = vmatpush.msra.mxu3 %v520_v14  ;;  %s408_s26 = scalar_lea.vmem [#allocation2], %s715_s19 }
  0x22   : > { %v420_v2 = vld [vmem:[%s419_s29] sm:$0xff]  ;;  %506 = vmatpush.msra.mxu2 %v485_v4  ;;  %v556_v17 = vld [vmem:[%s1138_s9 + $0x28] sm:$0xff]  ;;  %572 = vmatpush.msra.mxu0 %v557_v15  ;;  %v517_v20 = vld [vmem:[%s1136_s7 + $0x18] sm:$0xff]  ;;  %s415_s29 = scalar_lea.vmem [#allocation4], %s715_s19  ;;  %s604_s1 = sshll.u32 %s600_s3, 4  ;;  %s605_s1 = int_to_ptr.hbm [resolvable:$true] %s604_s1 }
  0x23   : > { %718 = vmatmul.msk.f32.vlgmr.msra.gmra.mxu1 %vm426_vm0, %v420_v2  ;;  %v773_v5 = vld [vmem:[%s1156_s2] ss:$0 sm:$0xff]  ;;  %540 = vmatpush.msra.mxu3 %v519_v16  ;;  %v554_v21 = vld [vmem:[%s1138_s9 + $0x18] sm:$0xff]  ;;  %v516_v22 = vld [vmem:[%s1136_s7 + $0x10] sm:$0xff]  ;;  %s616_s15 = sshll.u32 %s415_s29, 4  ;;  %s590_s30 = scalar_lea.sflag [#allocation5], %s1072_s17  ;;  %s617_s15 = int_to_ptr.vmem [resolvable:$true] %s616_s15 }
  0x24   : > { %476 = vmatpush.msrb.mxu1 %v451_v3  ;;  %507 = vmatpush.msra.mxu2 %v484_v9  ;;  %v482_v11 = vld [vmem:[%s1155_s5] sm:$0xff]  ;;  %v553_v23 = vld [vmem:[%s1138_s9 + $0x10] sm:$0xff]  ;;  %v515_v28 = vld [vmem:[%s1136_s7 + $0x8] sm:$0xff]  ;;  %s792_s28 = sshra.s32 %s619_s16, 4  ;;  %s798_s18 = scalar_lea.hbm %s1141_s12, 16  ;;  %s793_s28 = int_to_ptr.hbm [resolvable:$true] %s792_s28 }
  0x25   : > { %v555_v19 = vld [vmem:[%s1138_s9 + $0x20] sm:$0xff]  ;;  %573 = vmatpush.msra.mxu0 %v556_v17  ;;  %541 = vmatpush.msra.mxu3 %v518_v18  ;;  %v552_v29 = vld [vmem:[%s1138_s9 + $0x8] sm:$0xff]  ;;  %s794_s5 = scalar_lea.hbm %s793_s28, 8  ;;  %p799_p0 = scmp.lt.s32.totalorder %s793_s28, %s1141_s12 }
  0x26   : > { %508 = vmatpush.msra.mxu2 %v483_v10  ;;  %v774_v24 = vld [vmem:[%s1157_s4] ss:$0 sm:$0xff]  ;;  %s602_s4 = sshll.u32 %s408_s26, 4  ;;  %p795_p11 = scmp.ne.s32.totalorder %s793_s28, %s794_s5  ;;  %s603_s4 = int_to_ptr.vmem [resolvable:$true] %s602_s4 }
  0x27   : > { %574 = vmatpush.msra.mxu0 %v555_v19  ;;  %542 = vmatpush.msra.mxu3 %v517_v20  ;;  %v514_v30 = vld [vmem:[%s1136_s7] sm:$0xff]  ;;  %p800_p1 = scmp.lt.s32.totalorder %s798_s18, %s794_s5 }
  0x28   : > { %509 = vmatpush.msra.mxu2 %v482_v11  ;;  %v551_v31 = vld [vmem:[%s1138_s9] sm:$0xff]  ;;  %p796_p12 = pnand %p795_p11, %p977_p5 }
  0x29   : > { %575 = vmatpush.msra.mxu0 %v554_v21  ;;  %543 = vmatpush.msra.mxu3 %v516_v22  ;;  %v775_v32 = vld [vmem:[%s1158_s6] ss:$0 sm:$0xff]  ;;  %p801_p2 = por %p800_p1, %p799_p0 }
  0x2a   : > { %v776_v35 = vld [vmem:[%s1139_s10] ss:$0 sm:$0xff]  ;;  %p797_p13 = pneg %p796_p12 }
  0x2b   : > { %576 = vmatpush.msra.mxu0 %v553_v23  ;;  %544 = vmatpush.msra.mxu3 %v515_v28  ;;  %v777_v38 = vld [vmem:[%s1137_s8] ss:$0 sm:$0xff] }
  0x2c   : > { %p802_p3 = pnand %p801_p2, %p797_p13 }
  0x2d   : > { %577 = vmatpush.msra.mxu0 %v552_v29  ;;  %545 = vmatpush.msra.mxu3 %v514_v30 }
  0x2f   : > { %578 = vmatpush.msra.mxu0 %v551_v31 }
  0xa0   : > { %v447_v6 = vpop.f32.mrf.mxu1 }
  0xa1   : > { %v448_v7 = vadd.f32 %v773_v5, %v447_v6 }
  0xa3   : > { %v450_v8 = vmax.f32 %v448_v7, 0.0 }
  0xa5   : > { %719 = vmatmul.msk.f32.vlgmr.msrb.gmra.mxu1 %vm457_vm1, %v450_v8 }
 0x122   : > { %v478_v25 = vpop.f32.mrf.mxu1 }
 0x123   : > { %v479_v26 = vadd.f32 %v774_v24, %v478_v25 }
 0x125   : > { %v481_v27 = vmax.f32 %v479_v26, 0.0 }
 0x127   : > { %720 = vmatmul.msk.f32.vlgmr.msra.gmra.mxu2 %vm490_vm2, %v481_v27 }
 0x1aa   : > { %v511_v33 = vpop.f32.mrf.mxu2 }
 0x1ab   : > { %v512_v34 = vadd.f32 %v775_v32, %v511_v33 }
 0x1ad   : > { %721 = vmatmul.msk.f32.vlgmr.msra.gmra.mxu3 %vm526_vm3, %v512_v34  ;;  %722 = vmatmul.msk.f32.vlgmr.msra.gmra.mxu0 %vm526_vm3, %v512_v34 }
 0x22a   : > { %v580_v36 = vpop.f32.mrf.mxu0 }
 0x22b   : > { %v581_v37 = vadd.f32 %v776_v35, %v580_v36 }
 0x22d   : > { %583 = vst.msk [vmem:[%s415_s29] sm:$0xff] %vm490_vm2, %v581_v37 }
 0x22e   : > { %805 = shalt.err (!%p802_p3)
}
 0x22f   : > { %730 = dma.vmem_to_hbm [thread:$0]  (%p977_p5), %s617_s15, 128, %s619_s16, %s590_s30  }
 0x230   : > { %v547_v39 = vpop.f32.mrf.mxu3  ;;  %s585_s3 = scalar_lea.sflag [#allocation3], %s1072_s17  ;;  %s820_s19 = sshra.s32 %s605_s1, 4  ;;  %s821_s19 = int_to_ptr.hbm [resolvable:$true] %s820_s19 }
 0x231   : > { %v548_v40 = vadd.f32 %v777_v38, %v547_v39  ;;  %s822_s6 = scalar_lea.hbm %s821_s19, 8  ;;  %s826_s20 = scalar_lea.hbm %s1140_s11, 16 }
 0x232   : > { %p823_p4 = scmp.ne.s32.totalorder %s821_s19, %s822_s6  ;;  %p827_p9 = scmp.lt.s32.totalorder %s821_s19, %s1140_s11 }
 0x233   : > { %550 = vst.msk [vmem:[%s408_s26] sm:$0xff] %vm490_vm2, %v548_v40  ;;  %p828_p10 = scmp.lt.s32.totalorder %s826_s20, %s822_s6 }
 0x234   : > { %p824_p7 = pnand %p823_p4, %p977_p5 }
 0x235   : > { %p829_p11 = por %p828_p10, %p827_p9 }
 0x236   : > { %p825_p8 = pneg %p824_p7 }
 0x238   : > { %p830_p12 = pnand %p829_p11, %p825_p8 }
 0x23a   : > { %833 = shalt.err (!%p830_p12)
}
 0x23b   : > { %729 = dma.vmem_to_hbm [thread:$0]  (%p977_p5), %s603_s4, 128, %s605_s1, %s585_s3  }
 0x23c PF: > { %p740_p13 = scmp.ge.s32.totalorder %s872_s24, 2  ;;  %s630_s17 = sand.u32 1, %s860_s21  }
 0x23d   : > { %s631_s16 = scalar_lea.sflag [#allocation3], %s630_s17 }
 0x23e   : > { %p734_p0 = pnand %p740_p13, %p981_p6 }
 0x240   : > { %p735_p1 = pneg %p734_p0 }
 0x242   : > { %851 = dma.done.wait (%p735_p1), %s631_s16, 128  }
 0x243   : > { %853 = vsyncadd (%p735_p1), %s631_s16, 4294967168  ;;  %s641_s26 = scalar_lea.sflag [#allocation5], %s630_s17 }
 0x244   : > { %855 = dma.done.wait (%p735_p1), %s641_s26, 128  }
 0x245   : > { %857 = vsyncadd (%p735_p1), %s641_s26, 4294967168  ;;  %s1159_s13 = sld [smem:[#allocation8_spill]]  ;;  %p26_p5 = scmp.ge.s32.totalorder %s964_s27, 4  }
 0x246   : > { %s1160_s21 = smov %s864_s22  ;;  %s1161_s22 = smov %s868_s23 }
 0x247   : > { %s1163_s24 = smov %s964_s27  ;;  %28 = sbr.rel (!%p26_p5) target bundleno = 13 (0xd), region = 116 }
 0x24b   : > { %s1162_s23 = smov %s1159_s13 }
 0x24c   :  { %647 = vsyncpa [#allocation3], 1 }
 0x24d   :  { %649 = vsyncpa [#allocation3 + $0x1], 1 }
 0x24e   :  { %650 = vsyncpa [#allocation5], 1 }
 0x24f   :  { %652 = vsyncpa [#allocation5 + $0x1], 1 }

</bundles_post_ra>
